<compile_context>
chip_gen: v5e
topology: v5e:2x2
jax: 0.10.0
libtpu: 0.0.40
codegen_flags: <defaults>
</compile_context>

<pallas_src>
import functools

import jax
import jax.numpy as jnp
from jax.experimental import pallas as pl
from jax.experimental.pallas import tpu as pltpu


def _round_up(n, m):
    return ((n + m - 1) // m) * m


def _pad2(a, rows, cols):
    return jnp.pad(a, ((0, rows - a.shape[0]), (0, cols - a.shape[1])))


# --------------------------------------------------------------------------
# Kernel
# --------------------------------------------------------------------------
def _vae_color_labels_kernel(x_ref, w1_ref, b1_ref, w2_ref, b2_ref, eps_ref,
                             z_ref, x_scr, *, x_dim, z_dim, z_pad, matmul_dtype):
    d = matmul_dtype

    # Zero-extend the unpadded x tile (TB, x_dim) to (TB, Xp) lanes in VMEM.
    # The zero fill is redone every grid step (cheap VMEM-only work) so the
    # kernel stays correct when the "parallel" batch grid is sharded across
    # v7x's two TensorCores (a `program_id == 0` init would only run on one).
    x_scr[...] = jnp.zeros_like(x_scr)
    x_scr[:, :x_dim] = x_ref[...].astype(d)

    # h = relu(x @ W1 + b1)           (MXU matmul, f32 accumulation, f32 bias)
    h = jnp.dot(x_scr[...], w1_ref[...],
                preferred_element_type=jnp.float32) + b1_ref[...]
    h = jnp.maximum(h, 0.0)

    # Fused latent projection: y = h @ [W21 | 0.5*W22] + [b21 | 0.5*b22].
    # Each half is padded to z_pad lanes so both slices below start on a
    # 128-lane (vreg-aligned) boundary.
    y = jnp.dot(h.astype(d), w2_ref[...],
                preferred_element_type=jnp.float32) + b2_ref[...]

    mu = y[:, :z_dim]
    log_var_half = y[:, z_pad:z_pad + z_dim]   # already includes the 0.5 factor

    # z = mu + eps * exp(0.5 * log_var)        (f32 epilogue; exp runs on EUP)
    z_ref[...] = (mu + eps_ref[...] * jnp.exp(log_var_half)).astype(z_ref.dtype)


# --------------------------------------------------------------------------
# Parameter packing (one-time): pad weights, fuse fc21/fc22, pre-cast.
# --------------------------------------------------------------------------
def pack_params(params, matmul_dtype=jnp.float32):
    """params: w1 (X,H), b1 (1,H), w21 (H,Z), b21 (1,Z), w22 (H,Z), b22 (1,Z)."""
    X, H = params["w1"].shape
    Z = params["w21"].shape[1]
    Xp, Hp, Zp = _round_up(X, 128), _round_up(H, 128), _round_up(Z, 128)
    md = jnp.dtype(matmul_dtype)

    # Matmul operands pre-cast once here (no per-step cast of resident weights).
    w1p = _pad2(params["w1"], Xp, Hp).astype(md)
    b1p = _pad2(params["b1"], 1, Hp)                                 # f32 bias
    # Fold the 0.5 of `0.5 * log_var` into the fc22 half.
    w2p = jnp.concatenate(
        [_pad2(params["w21"], Hp, Zp), _pad2(0.5 * params["w22"], Hp, Zp)],
        axis=1).astype(md)                                           # (Hp, 2*Zp)
    b2p = jnp.concatenate(
        [_pad2(params["b21"], 1, Zp), _pad2(0.5 * params["b22"], 1, Zp)],
        axis=1)                                                      # f32 bias

    return dict(w1=w1p, b1=b1p, w2=w2p, b2=b2p,
                x_dim=X, h_dim=H, z_dim=Z, xp=Xp, hp=Hp, zp=Zp, matmul_dtype=md)


# --------------------------------------------------------------------------
# Wrapper
# --------------------------------------------------------------------------
def vae_color_labels_forward(x, packed, eps, *, block_batch=1024,
                             out_dtype=jnp.float32):
    """Pallas forward for VAEcolorlabels.

    x:      (B, xlabel_dim) float32 (cast to the packed matmul dtype if needed)
    packed: output of pack_params()
    eps:    (B, zlabel_dim) float32 standard-normal noise
    """
    B, X = x.shape
    Z = packed["z_dim"]
    Xp, Hp, Zp = packed["xp"], packed["hp"], packed["zp"]
    md = packed["matmul_dtype"]
    assert X == packed["x_dim"] and eps.shape == (B, Z)

    # Batch tile: multiple of the sublane granularity for the streamed dtype.
    sub = 16 if md == jnp.dtype(jnp.bfloat16) else 8
    TB = min(_round_up(block_batch, sub), _round_up(B, sub))
    # v7x megacore: keep >= 4 grid steps (>= 2 per TensorCore) on big batches,
    # without shrinking the tile below ~1024 rows (per-step overhead amortization).
    if B >= 4 * 1024:
        TB = min(TB, max(1024, _round_up((B + 3) // 4, sub)))
    Bp = _round_up(B, TB)
    grid = (Bp // TB,)

    # Stream x in the matmul dtype (halves x HBM bytes on the bf16 path);
    # eps stays f32 (only used in the f32 epilogue).
    x_in = x.astype(md)
    eps_in = eps.astype(jnp.float32)
    if Bp != B:
        # Row-only padding (no lane inflation); padded rows are sliced off below.
        x_in = jnp.pad(x_in, ((0, Bp - B), (0, 0)))
        eps_in = jnp.pad(eps_in, ((0, Bp - B), (0, 0)))

    kernel = functools.partial(_vae_color_labels_kernel,
                               x_dim=X, z_dim=Z, z_pad=Zp, matmul_dtype=md)

    z = pl.pallas_call(
        kernel,
        out_shape=jax.ShapeDtypeStruct((Bp, Z), out_dtype),
        grid=grid,
        in_specs=[
            pl.BlockSpec((TB, X), lambda i: (i, 0)),        # x tile, unpadded lanes
            pl.BlockSpec((Xp, Hp), lambda i: (0, 0)),       # W1 (resident, fetched once)
            pl.BlockSpec((1, Hp), lambda i: (0, 0)),        # b1
            pl.BlockSpec((Hp, 2 * Zp), lambda i: (0, 0)),   # fused [W21 | 0.5*W22]
            pl.BlockSpec((1, 2 * Zp), lambda i: (0, 0)),    # fused bias
            pl.BlockSpec((TB, Z), lambda i: (i, 0)),        # eps tile, unpadded lanes
        ],
        out_specs=pl.BlockSpec((TB, Z), lambda i: (i, 0)),  # unpadded z writeback
        scratch_shapes=[pltpu.VMEM((TB, Xp), md)],          # in-kernel x extension
        compiler_params=pltpu.CompilerParams(
            dimension_semantics=("parallel",)),
    )(x_in, packed["w1"], packed["b1"], packed["w2"], packed["b2"], eps_in)

    return z[:B] if Bp != B else z


# --------------------------------------------------------------------------
# Init + pure-JAX reference
# --------------------------------------------------------------------------
def init_params(key, xlabel_dim, hlabel_dim, zlabel_dim):
    """Deterministic init mimicking nn.Linear's U(-1/sqrt(fan_in), 1/sqrt(fan_in))."""
    ks = jax.random.split(key, 6)

    def lin(kw, kb, fan_in, fan_out):
        bound = 1.0 / jnp.sqrt(fan_in)
        w = jax.random.uniform(kw, (fan_in, fan_out), jnp.float32, -bound, bound)
        b = jax.random.uniform(kb, (1, fan_out), jnp.float32, -bound, bound)
        return w, b

    w1, b1 = lin(ks[0], ks[1], xlabel_dim, hlabel_dim)
    w21, b21 = lin(ks[2], ks[3], hlabel_dim, zlabel_dim)
    w22, b22 = lin(ks[4], ks[5], hlabel_dim, zlabel_dim)
    return dict(w1=w1, b1=b1, w21=w21, b21=b21, w22=w22, b22=b22)


def reference_forward(x, params, eps, matmul_dtype=jnp.float32):
    d = jnp.dtype(matmul_dtype)
    h = jnp.maximum(
        jnp.dot(x.astype(d), params["w1"].astype(d),
                preferred_element_type=jnp.float32) + params["b1"], 0.0)
    mu = jnp.dot(h.astype(d), params["w21"].astype(d),
                 preferred_element_type=jnp.float32) + params["b21"]
    log_var_half = jnp.dot(h.astype(d), (0.5 * params["w22"]).astype(d),
                           preferred_element_type=jnp.float32) + 0.5 * params["b22"]
    return mu + eps * jnp.exp(log_var_half)


# --------------------------------------------------------------------------
if __name__ == "__main__":
    # Small shapes consistent with the module's Linear stack.
    B, xlabel_dim, hlabel_dim, zlabel_dim = 8, 16, 32, 8

    key = jax.random.PRNGKey(0)
    k_param, k_x, k_eps = jax.random.split(key, 3)

    params = init_params(k_param, xlabel_dim, hlabel_dim, zlabel_dim)

    x = jax.random.normal(k_x, (B, xlabel_dim), jnp.float32)
    eps = jax.random.normal(k_eps, (B, zlabel_dim), jnp.float32)

    # f32 path (default) — tight tolerance vs pure-JAX reference.
    packed_f32 = pack_params(params, matmul_dtype=jnp.float32)
    z = vae_color_labels_forward(x, packed_f32, eps)
    z = jax.block_until_ready(z)
    z_ref = reference_forward(x, params, eps)
    assert z.shape == (B, zlabel_dim)
    assert jnp.allclose(z, z_ref, atol=1e-5, rtol=1e-5), "f32 mismatch vs reference"

    # bf16 matmul-operand path (v5e/v6e/v7x HBM-traffic optimization) —
    # f32 accumulation + f32 epilogue, compared against a bf16-cast reference.
    packed_bf16 = pack_params(params, matmul_dtype=jnp.bfloat16)
    z_bf16 = vae_color_labels_forward(x, packed_bf16, eps)
    z_bf16 = jax.block_until_ready(z_bf16)
    z_ref_bf16 = reference_forward(x, params, eps, matmul_dtype=jnp.bfloat16)
    assert z_bf16.shape == (B, zlabel_dim)
    assert jnp.allclose(z_bf16, z_ref_bf16, atol=1e-2, rtol=1e-2), \
        "bf16 mismatch vs bf16 reference"

    print("KERNEL_OK")
</pallas_src>

<mosaic_0001>
module attributes {stable_mosaic.version = 11 : i64} {
  func.func @_vae_color_labels_kernel(%arg0: i32, %arg1: memref<8x16xf32, #tpu.memory_space<vmem>>, %arg2: memref<128x128xf32, #tpu.memory_space<vmem>>, %arg3: memref<1x128xf32, #tpu.memory_space<vmem>>, %arg4: memref<128x256xf32, #tpu.memory_space<vmem>>, %arg5: memref<1x256xf32, #tpu.memory_space<vmem>>, %arg6: memref<8x8xf32, #tpu.memory_space<vmem>>, %arg7: memref<8x8xf32, #tpu.memory_space<vmem>>, %arg8: memref<8x128xf32, #tpu.memory_space<vmem>>) attributes {dimension_semantics = [#tpu.dimension_semantics<parallel>], iteration_bounds = array<i64: 1>, scalar_prefetch = 0 : i64, scratch_operands = 1 : i64, tpu.core_type = #tpu.core_type<tc>, window_params = [{transform_indices = @transform_0, window_bounds = array<i64: 8, 16>}, {pipeline_mode = #tpu.pipeline_mode<synchronous>, transform_indices = @transform_1, window_bounds = array<i64: 128, 128>}, {pipeline_mode = #tpu.pipeline_mode<synchronous>, transform_indices = @transform_2, window_bounds = array<i64: 1, 128>}, {pipeline_mode = #tpu.pipeline_mode<synchronous>, transform_indices = @transform_3, window_bounds = array<i64: 128, 256>}, {pipeline_mode = #tpu.pipeline_mode<synchronous>, transform_indices = @transform_4, window_bounds = array<i64: 1, 256>}, {transform_indices = @transform_5, window_bounds = array<i64: 8, 8>}, {transform_indices = @transform_6, window_bounds = array<i64: 8, 8>}]} {
    %cst = arith.constant 0.000000e+00 : f32
    %0 = vector.broadcast %cst : f32 to vector<8x128xf32>
    %c0 = arith.constant 0 : index
    %c0_0 = arith.constant 0 : index
    %1 = vector.load %arg8[%c0, %c0_0] : memref<8x128xf32, #tpu.memory_space<vmem>>, vector<8x128xf32>
    tpu.vector_store %arg8[%c0, %c0_0], %0 {strides = array<i32>} : memref<8x128xf32, #tpu.memory_space<vmem>>, vector<8x128xf32>,
    %c0_1 = arith.constant 0 : index
    %c0_2 = arith.constant 0 : index
    %2 = vector.load %arg1[%c0_1, %c0_2] : memref<8x16xf32, #tpu.memory_space<vmem>>, vector<8x16xf32>
    %c0_3 = arith.constant 0 : index
    %c0_4 = arith.constant 0 : index
    %3 = vector.load %arg8[%c0_3, %c0_4] : memref<8x128xf32, #tpu.memory_space<vmem>>, vector<8x16xf32>
    tpu.vector_store %arg8[%c0_3, %c0_4], %2 {strides = array<i32>} : memref<8x128xf32, #tpu.memory_space<vmem>>, vector<8x16xf32>,
    %c0_5 = arith.constant 0 : index
    %c0_6 = arith.constant 0 : index
    %4 = vector.load %arg8[%c0_5, %c0_6] : memref<8x128xf32, #tpu.memory_space<vmem>>, vector<8x128xf32>
    %c0_7 = arith.constant 0 : index
    %c0_8 = arith.constant 0 : index
    %5 = vector.load %arg2[%c0_7, %c0_8] : memref<128x128xf32, #tpu.memory_space<vmem>>, vector<128x128xf32>
    %cst_9 = arith.constant dense<0.000000e+00> : vector<8x128xf32>
    %6 = tpu.matmul %4, %5, %cst_9 {dimension_numbers = #tpu.dot_dimension_numbers<[1], [0], [0], [1], [0, 0, 1, 1], [], []>} : vector<8x128xf32>, vector<128x128xf32>, vector<8x128xf32> -> vector<8x128xf32>
    %c0_10 = arith.constant 0 : index
    %c0_11 = arith.constant 0 : index
    %7 = vector.load %arg3[%c0_10, %c0_11] : memref<1x128xf32, #tpu.memory_space<vmem>>, vector<1x128xf32>
    %8 = vector.broadcast %7 : vector<1x128xf32> to vector<8x128xf32>
    %9 = arith.addf %6, %8 : vector<8x128xf32>
    %cst_12 = arith.constant 0.000000e+00 : f32
    %10 = vector.broadcast %cst_12 : f32 to vector<8x128xf32>
    %11 = arith.maximumf %9, %10 : vector<8x128xf32>
    %c0_13 = arith.constant 0 : index
    %c0_14 = arith.constant 0 : index
    %12 = vector.load %arg4[%c0_13, %c0_14] : memref<128x256xf32, #tpu.memory_space<vmem>>, vector<128x256xf32>
    %cst_15 = arith.constant dense<0.000000e+00> : vector<8x256xf32>
    %13 = tpu.matmul %11, %12, %cst_15 {dimension_numbers = #tpu.dot_dimension_numbers<[1], [0], [0], [1], [0, 0, 1, 1], [], []>} : vector<8x128xf32>, vector<128x256xf32>, vector<8x256xf32> -> vector<8x256xf32>
    %c0_16 = arith.constant 0 : index
    %c0_17 = arith.constant 0 : index
    %14 = vector.load %arg5[%c0_16, %c0_17] : memref<1x256xf32, #tpu.memory_space<vmem>>, vector<1x256xf32>
    %15 = vector.broadcast %14 : vector<1x256xf32> to vector<8x256xf32>
    %16 = arith.addf %13, %15 : vector<8x256xf32>
    %17 = vector.extract_strided_slice %16 {offsets = [0, 0], sizes = [8, 8], strides = [1, 1]} : vector<8x256xf32> to vector<8x8xf32>
    %18 = vector.extract_strided_slice %16 {offsets = [0, 128], sizes = [8, 8], strides = [1, 1]} : vector<8x256xf32> to vector<8x8xf32>
    %c0_18 = arith.constant 0 : index
    %c0_19 = arith.constant 0 : index
    %19 = vector.load %arg6[%c0_18, %c0_19] : memref<8x8xf32, #tpu.memory_space<vmem>>, vector<8x8xf32>
    %20 = math.exp %18 : vector<8x8xf32>
    %21 = arith.mulf %19, %20 : vector<8x8xf32>
    %22 = arith.addf %17, %21 : vector<8x8xf32>
    %c0_20 = arith.constant 0 : index
    %c0_21 = arith.constant 0 : index
    %23 = vector.load %arg7[%c0_20, %c0_21] : memref<8x8xf32, #tpu.memory_space<vmem>>, vector<8x8xf32>
    tpu.vector_store %arg7[%c0_20, %c0_21], %22 {strides = array<i32>} : memref<8x8xf32, #tpu.memory_space<vmem>>, vector<8x8xf32>,
    return
  }
  func.func @transform_0(%arg0: i32) -> (i32, i32) {
    %c0_i32 = arith.constant 0 : i32
    %c0_i32_0 = arith.constant 0 : i32
    return %arg0, %c0_i32 : i32, i32
  }
  func.func @transform_1(%arg0: i32) -> (i32, i32) {
    %c0_i32 = arith.constant 0 : i32
    %c0_i32_0 = arith.constant 0 : i32
    %c0_i32_1 = arith.constant 0 : i32
    return %c0_i32, %c0_i32_0 : i32, i32
  }
  func.func @transform_2(%arg0: i32) -> (i32, i32) {
    %c0_i32 = arith.constant 0 : i32
    %c0_i32_0 = arith.constant 0 : i32
    %c0_i32_1 = arith.constant 0 : i32
    return %c0_i32, %c0_i32_0 : i32, i32
  }
  func.func @transform_3(%arg0: i32) -> (i32, i32) {
    %c0_i32 = arith.constant 0 : i32
    %c0_i32_0 = arith.constant 0 : i32
    %c0_i32_1 = arith.constant 0 : i32
    return %c0_i32, %c0_i32_0 : i32, i32
  }
  func.func @transform_4(%arg0: i32) -> (i32, i32) {
    %c0_i32 = arith.constant 0 : i32
    %c0_i32_0 = arith.constant 0 : i32
    %c0_i32_1 = arith.constant 0 : i32
    return %c0_i32, %c0_i32_0 : i32, i32
  }
  func.func @transform_5(%arg0: i32) -> (i32, i32) {
    %c0_i32 = arith.constant 0 : i32
    %c0_i32_0 = arith.constant 0 : i32
    return %arg0, %c0_i32 : i32, i32
  }
  func.func @transform_6(%arg0: i32) -> (i32, i32) {
    %c0_i32 = arith.constant 0 : i32
    %c0_i32_0 = arith.constant 0 : i32
    return %arg0, %c0_i32 : i32, i32
  }
}

</mosaic_0001>

<bundles_post_ra>
// kernel: tpu_custom_call.1
= control target key start
LH: loop header
LB: loop body
LE: loop exit
PB: predicated region body
PF: predicated region fallthrough
CT: control target
= control target key end

     0   :  { %11 = vsyncpa [#allocation4], 0  ;;  %s440_s0 = inlined_call_operand.hbm [shape: f32[8,16], index: 0, kind: input, shape index: {}]   ;;  %s441_s1 = inlined_call_operand.hbm [shape: f32[128,128], index: 1, kind: input, shape index: {}]   ;;  %s442_s2 = inlined_call_operand.vmem [shape: f32[1,128], index: 2, kind: input, shape index: {}]   ;;  %s443_s3 = inlined_call_operand.hbm [shape: f32[128,256], index: 3, kind: input, shape index: {}]   ;;  %s444_s4 = inlined_call_operand.vmem [shape: f32[1,256], index: 4, kind: input, shape index: {}]   ;;  %s445_s5 = inlined_call_operand.hbm [shape: f32[8,8], index: 5, kind: input, shape index: {}]   ;;  %s446_s6 = inlined_call_operand.hbm [shape: f32[8,8], index: 6, kind: output, shape index: {}]  }
   0x1   :  { %12 = vsyncpa [#allocation7], 0 }
   0x2   :  { %13 = vsyncpa [#allocation10], 0  ;;  %s30_s23 = sshll.u32 %s441_s1, 4  ;;  %s31_s23 = int_to_ptr.hbm [resolvable:$true] %s30_s23 }
   0x3   :  { %14 = vsyncpa [#allocation5], 0  ;;  %s374_s24 = smov [#allocation6]   ;;  %s20_s28 = sshll.u32 %s440_s0, 4  ;;  %s21_s28 = int_to_ptr.hbm [resolvable:$true] %s20_s28 }
   0x4   :  { %s32_s25 = sshll.u32 %s374_s24, 4  ;;  %s375_s29 = smov 128   ;;  %s33_s25 = int_to_ptr.vmem [resolvable:$true] %s32_s25 }
   0x5   :  { %s376_s30 = smov 8   ;;  %s377_s7 = smov [#allocation3]  }
   0x6   :  { %38 = dma.hbm_to_vmem [thread:$0]  %s31_s23, 2048, %s33_s25, [#allocation7], %s375_s29, %s375_s29, %s376_s30  }
   0x7   :  { %s22_s8 = sshll.u32 %s377_s7, 4  ;;  %s45_s11 = sshll.u32 %s443_s3, 4  ;;  %s23_s8 = int_to_ptr.vmem [resolvable:$true] %s22_s8  ;;  %s46_s11 = int_to_ptr.hbm [resolvable:$true] %s45_s11 }
   0x8   :  { %25 = dma.hbm_to_vmem [thread:$0]  %s21_s28, 128, %s23_s8, [#allocation4]  }
   0x9   :  { %s378_s1 = smov [#allocation8]   ;;  %s61_s0 = sshll.u32 %s445_s5, 4  ;;  %s62_s0 = int_to_ptr.hbm [resolvable:$true] %s61_s0 }
   0xa   :  { %s47_s12 = sshll.u32 %s378_s1, 4  ;;  %s379_s15 = smov 256   ;;  %s48_s12 = int_to_ptr.vmem [resolvable:$true] %s47_s12 }
   0xb   :  { %s380_s16 = smov 16   ;;  %s381_s17 = smov [#allocation9]  }
   0xc   :  { %53 = dma.hbm_to_vmem [thread:$0]  %s46_s11, 4096, %s48_s12, [#allocation7], %s379_s15, %s379_s15, %s380_s16  }
   0xd   :  { %s63_s18 = sshll.u32 %s381_s17, 4  ;;  %s64_s18 = int_to_ptr.vmem [resolvable:$true] %s63_s18 }
   0xe   :  { %66 = dma.hbm_to_vmem [thread:$0]  %s62_s0, 128, %s64_s18, [#allocation10]  }
   0xf   :  { %366 = dma.done.wait [#allocation4], 128  }
  0x10   :  { %367 = vsyncadd [#allocation4], 4294967168 }
  0x11   :  { %368 = dma.done.wait [#allocation7], 6144  }
  0x12   :  { %369 = vsyncadd [#allocation7], 4294961152 }
  0x13   :  { %370 = dma.done.wait [#allocation10], 128  }
  0x14   :  { %371 = vsyncadd [#allocation10], 4294967168  ;;  %v382_v0 = vmov 0.0   ;;  %v103_v1 = vld [vmem:[#allocation6 + $0x78] sm:$0xff]  ;;  %v102_v2 = vld [vmem:[#allocation6 + $0x70] sm:$0xff]  ;;  %vm85_vm0 = vcmask 130048  }
  0x15   :  { %83 = vst [vmem:[#allocation2] sm:$0xff] %v382_v0  ;;  %108 = vmatpush.msra.mxu0 %v103_v1  ;;  %v101_v3 = vld [vmem:[#allocation6 + $0x68] sm:$0xff]  ;;  %v100_v4 = vld [vmem:[#allocation6 + $0x60] sm:$0xff]  ;;  %v99_v5 = vld [vmem:[#allocation6 + $0x58] sm:$0xff]  ;;  %s383_s21 = smov [#allocation11]   ;;  %s221_s24 = sshll.u32 %s446_s6, 4  ;;  %s222_s24 = int_to_ptr.hbm [resolvable:$true] %s221_s24 }
  0x16   :  { %v84_v6 = vld [vmem:[#allocation3] sm:$0xff]  ;;  %v159_v7 = vld [vmem:[#allocation8 + $0xf0] sm:$0xff]  ;;  %v157_v9 = vld [vmem:[#allocation8 + $0xe0] sm:$0xff]  ;;  %vm212_vm1 = vcmask 64512  }
  0x17   :  { %109 = vmatpush.msra.mxu0 %v102_v2  ;;  %86 = vst.msk [vmem:[#allocation2] sm:$0xff] %vm85_vm0, %v84_v6  ;;  %167 = vmatpush.msra.mxu1 %v159_v7  ;;  %v160_v8 = vld [vmem:[#allocation8 + $0xf8] sm:$0xff]  ;;  %v158_v10 = vld [vmem:[#allocation8 + $0xe8] sm:$0xff]  ;;  %v155_v11 = vld [vmem:[#allocation8 + $0xd0] sm:$0xff] }
  0x18   :  { %187 = vmatpush.msra.mxu2 %v160_v8  ;;  %v98_v12 = vld [vmem:[#allocation6 + $0x50] sm:$0xff]  ;;  %v156_v13 = vld [vmem:[#allocation8 + $0xd8] sm:$0xff]  ;;  %v153_v14 = vld [vmem:[#allocation8 + $0xc0] sm:$0xff] }
  0x19   :  { %110 = vmatpush.msra.mxu0 %v101_v3  ;;  %168 = vmatpush.msra.mxu1 %v157_v9  ;;  %v97_v15 = vld [vmem:[#allocation6 + $0x48] sm:$0xff]  ;;  %v151_v17 = vld [vmem:[#allocation8 + $0xb0] sm:$0xff]  ;;  %v96_v18 = vld [vmem:[#allocation6 + $0x40] sm:$0xff] }
  0x1a   :  { %188 = vmatpush.msra.mxu2 %v158_v10  ;;  %v154_v16 = vld [vmem:[#allocation8 + $0xc8] sm:$0xff]  ;;  %v152_v19 = vld [vmem:[#allocation8 + $0xb8] sm:$0xff]  ;;  %v149_v20 = vld [vmem:[#allocation8 + $0xa0] sm:$0xff] }
  0x1b   :  { %111 = vmatpush.msra.mxu0 %v100_v4  ;;  %169 = vmatpush.msra.mxu1 %v155_v11  ;;  %v95_v21 = vld [vmem:[#allocation6 + $0x38] sm:$0xff]  ;;  %v150_v22 = vld [vmem:[#allocation8 + $0xa8] sm:$0xff]  ;;  %v147_v23 = vld [vmem:[#allocation8 + $0x90] sm:$0xff] }
  0x1c   :  { %189 = vmatpush.msra.mxu2 %v156_v13  ;;  %v94_v24 = vld [vmem:[#allocation6 + $0x30] sm:$0xff]  ;;  %v148_v25 = vld [vmem:[#allocation8 + $0x98] sm:$0xff]  ;;  %v145_v26 = vld [vmem:[#allocation8 + $0x80] sm:$0xff] }
  0x1d   :  { %112 = vmatpush.msra.mxu0 %v99_v5  ;;  %170 = vmatpush.msra.mxu1 %v153_v14  ;;  %v93_v27 = vld [vmem:[#allocation6 + $0x28] sm:$0xff]  ;;  %v143_v29 = vld [vmem:[#allocation8 + $0x70] sm:$0xff]  ;;  %v92_v30 = vld [vmem:[#allocation6 + $0x20] sm:$0xff] }
  0x1e   :  { %190 = vmatpush.msra.mxu2 %v154_v16  ;;  %v146_v28 = vld [vmem:[#allocation8 + $0x88] sm:$0xff]  ;;  %v144_v31 = vld [vmem:[#allocation8 + $0x78] sm:$0xff]  ;;  %v141_v32 = vld [vmem:[#allocation8 + $0x60] sm:$0xff] }
  0x1f   :  { %113 = vmatpush.msra.mxu0 %v98_v12  ;;  %171 = vmatpush.msra.mxu1 %v151_v17  ;;  %v91_v33 = vld [vmem:[#allocation6 + $0x18] sm:$0xff]  ;;  %v142_v34 = vld [vmem:[#allocation8 + $0x68] sm:$0xff]  ;;  %v139_v35 = vld [vmem:[#allocation8 + $0x50] sm:$0xff] }
  0x20   :  { %191 = vmatpush.msra.mxu2 %v152_v19  ;;  %v90_v36 = vld [vmem:[#allocation6 + $0x10] sm:$0xff]  ;;  %v140_v37 = vld [vmem:[#allocation8 + $0x58] sm:$0xff]  ;;  %v137_v38 = vld [vmem:[#allocation8 + $0x40] sm:$0xff] }
  0x21   :  { %114 = vmatpush.msra.mxu0 %v97_v15  ;;  %172 = vmatpush.msra.mxu1 %v149_v20  ;;  %v89_v39 = vld [vmem:[#allocation6 + $0x8] sm:$0xff]  ;;  %v135_v41 = vld [vmem:[#allocation8 + $0x30] sm:$0xff]  ;;  %v88_v42 = vld [vmem:[#allocation6] sm:$0xff] }
  0x22   :  { %192 = vmatpush.msra.mxu2 %v150_v22  ;;  %v138_v40 = vld [vmem:[#allocation8 + $0x48] sm:$0xff]  ;;  %v136_v43 = vld [vmem:[#allocation8 + $0x38] sm:$0xff]  ;;  %v87_v44 = vld [vmem:[#allocation2] sm:$0xff] }
  0x23   :  { %115 = vmatpush.msra.mxu0 %v96_v18  ;;  %173 = vmatpush.msra.mxu1 %v147_v23  ;;  %v133_v45 = vld [vmem:[#allocation8 + $0x20] sm:$0xff]  ;;  %v134_v46 = vld [vmem:[#allocation8 + $0x28] sm:$0xff]  ;;  %v131_v47 = vld [vmem:[#allocation8 + $0x10] sm:$0xff] }
  0x24   :  { %193 = vmatpush.msra.mxu2 %v148_v25  ;;  %v132_v48 = vld [vmem:[#allocation8 + $0x18] sm:$0xff]  ;;  %v129_v49 = vld [vmem:[#allocation8] sm:$0xff]  ;;  %v130_v50 = vld [vmem:[#allocation8 + $0x8] sm:$0xff] }
  0x25   :  { %116 = vmatpush.msra.mxu0 %v95_v21  ;;  %174 = vmatpush.msra.mxu1 %v145_v26  ;;  %v243_v51 = vld [vmem:[%s442_s2] ss:$0 sm:$0xff]  ;;  %v207_v62 = vld [vmem:[#allocation9] sm:$0xff]  ;;  %s219_s2 = sshll.u32 %s383_s21, 4  ;;  %s220_s2 = int_to_ptr.vmem [resolvable:$true] %s219_s2 }
  0x26   :  { %194 = vmatpush.msra.mxu2 %v146_v28  ;;  %v161_v55 = vld [vmem:[%s444_s4] sm:$0x3] }
  0x27   :  { %117 = vmatpush.msra.mxu0 %v94_v24  ;;  %175 = vmatpush.msra.mxu1 %v143_v29  ;;  %v164_v56 = vperm.slane %v161_v55, 1  ;;  %v163_v60 = vperm.slane %v161_v55, 0 }
  0x28   :  { %195 = vmatpush.msra.mxu2 %v144_v31 }
  0x29   :  { %118 = vmatpush.msra.mxu0 %v93_v27  ;;  %176 = vmatpush.msra.mxu1 %v141_v32 }
  0x2a   :  { %196 = vmatpush.msra.mxu2 %v142_v34 }
  0x2b   :  { %119 = vmatpush.msra.mxu0 %v92_v30  ;;  %177 = vmatpush.msra.mxu1 %v139_v35 }
  0x2c   :  { %197 = vmatpush.msra.mxu2 %v140_v37 }
  0x2d   :  { %120 = vmatpush.msra.mxu0 %v91_v33  ;;  %178 = vmatpush.msra.mxu1 %v137_v38 }
  0x2e   :  { %198 = vmatpush.msra.mxu2 %v138_v40 }
  0x2f   :  { %121 = vmatpush.msra.mxu0 %v90_v36  ;;  %179 = vmatpush.msra.mxu1 %v135_v41 }
  0x30   :  { %199 = vmatpush.msra.mxu2 %v136_v43 }
  0x31   :  { %122 = vmatpush.msra.mxu0 %v89_v39  ;;  %180 = vmatpush.msra.mxu1 %v133_v45 }
  0x32   :  { %200 = vmatpush.msra.mxu2 %v134_v46 }
  0x33   :  { %123 = vmatpush.msra.mxu0 %v88_v42  ;;  %181 = vmatpush.msra.mxu1 %v131_v47 }
  0x34   :  { %124 = vmatmul.f32.vlgmr.msra.gmra.mxu0 %v87_v44  ;;  %201 = vmatpush.msra.mxu2 %v132_v48 }
  0x35   :  { %182 = vmatpush.msra.mxu1 %v129_v49 }
  0x36   :  { %202 = vmatpush.msra.mxu2 %v130_v50 }
  0xb1   :  { %v125_v52 = vpop.f32.mrf.mxu0 }
  0xb2   :  { %v126_v53 = vadd.f32 %v243_v51, %v125_v52 }
  0xb4   :  { %v128_v54 = vmax.f32 %v126_v53, 0.0 }
  0xb6   :  { %183 = vmatmul.f32.vlgmr.msra.gmra.mxu1 %v128_v54  ;;  %203 = vmatmul.f32.vlgmr.msra.gmra.mxu2 %v128_v54 }
 0x133   :  { %v184_v61 = vpop.f32.mrf.mxu1 }
 0x134   :  { %v185_v0 = vadd.f32 %v184_v61, %v163_v60 }
 0x139   :  { %v204_v57 = vpop.f32.mrf.mxu2 }
 0x13a   :  { %v205_v58 = vadd.f32 %v204_v57, %v164_v56 }
 0x13c   :  { %v208_v59 = vmul.f32 1.442695, %v205_v58 }
 0x13e   :  { %244 = vpow2.f32 %v208_v59 }
 0x144   :  { %v245_v63 = vpop.eup %244 }
 0x145   :  { %v210_v1 = vmul.f32 %v245_v63, %v207_v62 }
 0x147   :  { %v211_v2 = vadd.f32 %v210_v1, %v185_v0 }
 0x149   :  { %213 = vst.msk [vmem:[#allocation11] sm:$0xff] %vm212_vm1, %v211_v2 }
 0x14a   :  { %224 = dma.vmem_to_hbm [thread:$0]  %s220_s2, 128, %s222_s24, [#allocation5]  }
 0x14b   :  { %372 = dma.done.wait [#allocation5], 128  }
 0x14c   :  { %373 = vsyncadd [#allocation5], 4294967168 }
 0x14d   :  { %229 = vsyncpa [#allocation4], 1 }
 0x14e   :  { %230 = vsyncpa [#allocation7], 1 }
 0x14f   :  { %231 = vsyncpa [#allocation10], 1 }
 0x150   :  { %232 = vsyncpa [#allocation5], 1 }

</bundles_post_ra>
